<compile_context>
chip_gen: v7x
topology: tpu7x:2x2x1
jax: 0.10.0
libtpu: 0.0.40
codegen_flags: <defaults>
</compile_context>

<pallas_src>
import math

import jax
import jax.numpy as jnp
from jax import lax
from jax.experimental import pallas as pl
from jax.experimental.pallas import tpu as pltpu


def _round_up(x, m):
    return ((x + m - 1) // m) * m


def _rnn_kernel(x_ref, wih_ref, whh_ref, b_ref, h0_ref, out_ref, h_scratch):
    """One time-chunk of the Elman recurrence.

    x_ref    : (B, Tc, I)   batch_first input chunk
    wih_ref  : (I, Hp)      W_ih^T, hidden dim zero-padded to Hp (lane-dense)
    whh_ref  : (Hp, Hp)     W_hh^T, zero-padded
    b_ref    : (1, Hp)      b_ih + b_hh, zero-padded
    h0_ref   : (B, Hp)      initial hidden state, zero-padded
    out_ref  : (B, Tc, Hp)  h_t for the chunk's timesteps
    h_scratch: (B, Hp) f32  hidden state carried across grid steps
    """
    B, Tc, I = x_ref.shape
    Hp = out_ref.shape[2]

    # First chunk: initialize the carried hidden state from h0.
    @pl.when(pl.program_id(0) == 0)
    def _init():
        h_scratch[...] = h0_ref[...].astype(jnp.float32)

    wih = wih_ref[...]
    whh = whh_ref[...]
    bias = b_ref[...]                         # (1, Hp)

    # Hoisted input projection for the whole chunk: ONE MXU matmul with
    # M = B*Tc rows (Tc % 8 == 0 -> the reshape is a tile-aligned no-op) and a
    # single bias broadcast.  The result stays in vregs (no VMEM scratch).
    x2d = x_ref[...].reshape(B * Tc, I)
    pre = jnp.dot(x2d, wih, preferred_element_type=jnp.float32) + bias
    pre = pre.reshape(B, Tc, Hp)

    # Serial recurrence.  h lives in registers; the (bounded) static unroll
    # gives every index statically and lets the scheduler hoist the
    # h-independent pre[:, t, :] extractions off the h -> MXU -> tanh chain.
    h = h_scratch[...]                        # (B, Hp) f32
    for t in range(Tc):
        h = jnp.tanh(
            pre[:, t, :]
            + jnp.dot(h, whh, preferred_element_type=jnp.float32)
        )
        out_ref[:, t, :] = h.astype(out_ref.dtype)   # hidden under serial latency

    h_scratch[...] = h                        # carry to the next chunk


def prepare_rnn_params(w_ih, w_hh, b_ih, b_hh, param_dtype=None):
    """Pad/transpose the weights ONCE (hoisted out of the per-call path).

    Returns (wih_p, whh_p, bias_p, H, Hp) with the hidden dim zero-padded to a
    multiple of 128 (lane width).  Padded columns are zero, so padded hidden
    lanes stay tanh(0)=0 and never perturb the real ones.
    """
    H, I = w_ih.shape
    Hp = _round_up(H, 128)
    dt = param_dtype if param_dtype is not None else w_ih.dtype
    bias = (b_ih + b_hh).astype(dt)
    if Hp == H:                               # no padding / slicing needed
        wih_p = jnp.transpose(w_ih).astype(dt)
        whh_p = jnp.transpose(w_hh).astype(dt)
        bias_p = bias[None, :]
    else:
        wih_p = jnp.zeros((I, Hp), dt).at[:, :H].set(jnp.transpose(w_ih).astype(dt))
        whh_p = jnp.zeros((Hp, Hp), dt).at[:H, :H].set(jnp.transpose(w_hh).astype(dt))
        bias_p = jnp.zeros((1, Hp), dt).at[0, :H].set(bias)
    return wih_p, whh_p, bias_p, H, Hp


def rnn_forward_prepared(x, prepared, h0=None, *, chunk_t=None):
    """RNNBase.forward(x) default path (include_first=True) with prepared weights."""
    wih_p, whh_p, bias_p, H, Hp = prepared
    B, T, I = x.shape
    if T == 0:
        raise NotImplementedError("empty sequence")       # matches RNNBase

    if h0 is None:
        h0 = jnp.zeros((B, H), dtype=x.dtype)              # default_initial_state

    # Time-chunk: multiple of 8 (sublane tile), capped so the static unroll
    # stays small; ragged T is zero-padded up to a chunk multiple (padded
    # steps are computed and discarded — cheap, keeps compile time bounded).
    if chunk_t is None:
        chunk_t = min(32, _round_up(T, 8))
    chunk_t = max(8, _round_up(chunk_t, 8))
    Tp = _round_up(T, chunk_t)
    xp = x if Tp == T else jnp.pad(x, ((0, 0), (0, Tp - T), (0, 0)))

    h0_p = h0 if Hp == H else jnp.zeros((B, Hp), x.dtype).at[:, :H].set(h0)

    grid = (Tp // chunk_t,)
    out_p = pl.pallas_call(
        _rnn_kernel,
        out_shape=jax.ShapeDtypeStruct((B, Tp, Hp), x.dtype),
        grid_spec=pltpu.PrefetchScalarGridSpec(
            num_scalar_prefetch=0,
            grid=grid,
            in_specs=[
                pl.BlockSpec((B, chunk_t, I), lambda c: (0, c, 0)),  # x chunk (pipelined)
                pl.BlockSpec((I, Hp), lambda c: (0, 0)),             # W_ih^T  (resident)
                pl.BlockSpec((Hp, Hp), lambda c: (0, 0)),            # W_hh^T  (resident)
                pl.BlockSpec((1, Hp), lambda c: (0, 0)),             # bias    (resident)
                pl.BlockSpec((B, Hp), lambda c: (0, 0)),             # h0      (resident)
            ],
            out_specs=pl.BlockSpec((B, chunk_t, Hp), lambda c: (0, c, 0)),
            scratch_shapes=[
                pltpu.VMEM((B, Hp), jnp.float32),   # hidden state carried across chunks
            ],
        ),
        compiler_params=pltpu.CompilerParams(
            dimension_semantics=("arbitrary",),     # time chunks are sequential
            vmem_limit_bytes=48 * 1024 * 1024,      # headroom for large Hp (v5e default 16 MiB)
        ),
    )(xp, wih_p, whh_p, bias_p, h0_p)

    # include_first=True: prepend h0; strip time padding and lane padding.
    # TODO(synk): fusing the h0 row / the :H slice into the kernel output would
    #             save one HBM pass but needs an offset-by-1 (non-block-aligned)
    #             output window; kept in the wrapper for now.
    return jnp.concatenate([h0[:, None, :], out_p[:, :T, :H]], axis=1)


def rnn_forward(x, w_ih, w_hh, b_ih, b_hh, h0=None, *, chunk_t=None):
    prepared = prepare_rnn_params(w_ih, w_hh, b_ih, b_hh)
    return rnn_forward_prepared(x, prepared, h0, chunk_t=chunk_t)


def _reference_forward(x, w_ih, w_hh, b_ih, b_hh, h0):
    """Pure-JAX reference (same math as torch.nn.RNN + include_first concat)."""
    def step(h, x_t):
        h_new = jnp.tanh(x_t @ w_ih.T + b_ih + h @ w_hh.T + b_hh)
        return h_new, h_new

    x_tm = jnp.transpose(x, (1, 0, 2))
    _, hs = lax.scan(step, h0, x_tm)               # (T, B, H)
    out = jnp.concatenate([h0[None], hs], axis=0)  # (T+1, B, H)
    return jnp.transpose(out, (1, 0, 2))


if __name__ == "__main__":
    # Small shapes consistent with the module: batch=2, input_size=16, hidden=32.
    B, I, H = 2, 16, 32

    key = jax.random.PRNGKey(0)
    kx, k1, k2, k3, k4, kh = jax.random.split(key, 6)

    # Deterministic init mirroring torch.nn.RNN's U(-1/sqrt(H), 1/sqrt(H)).
    bound = 1.0 / math.sqrt(H)
    w_ih = jax.random.uniform(k1, (H, I), jnp.float32, -bound, bound)
    w_hh = jax.random.uniform(k2, (H, H), jnp.float32, -bound, bound)
    b_ih = jax.random.uniform(k3, (H,), jnp.float32, -bound, bound)
    b_hh = jax.random.uniform(k4, (H,), jnp.float32, -bound, bound)

    prepared = prepare_rnn_params(w_ih, w_hh, b_ih, b_hh)

    # (T, chunk_t, nonzero h0): multi-chunk carry, default single chunk, ragged T.
    cases = ((16, 8, False), (16, None, True), (13, None, False))
    for T, chunk_t, use_h0 in cases:
        x = jax.random.normal(jax.random.fold_in(kx, T), (B, T, I), jnp.float32)
        if use_h0:
            h0 = 0.1 * jax.random.normal(kh, (B, H), jnp.float32)
        else:
            h0 = jnp.zeros((B, H), jnp.float32)       # default_initial_state

        out = rnn_forward_prepared(x, prepared, h0, chunk_t=chunk_t)
        out = jax.block_until_ready(out)

        ref = _reference_forward(x, w_ih, w_hh, b_ih, b_hh, h0)
        assert out.shape == (B, T + 1, H), out.shape
        err = float(jnp.max(jnp.abs(out - ref)))
        assert jnp.allclose(out, ref, atol=1e-5, rtol=1e-5), (T, chunk_t, err)

    print("KERNEL_OK")
</pallas_src>

<mosaic_0001>
module attributes {stable_mosaic.version = 11 : i64} {
  func.func @_rnn_kernel(%arg0: i32, %arg1: memref<2x8x16xf32, #tpu.memory_space<vmem>>, %arg2: memref<16x128xf32, #tpu.memory_space<vmem>>, %arg3: memref<128x128xf32, #tpu.memory_space<vmem>>, %arg4: memref<1x128xf32, #tpu.memory_space<vmem>>, %arg5: memref<2x128xf32, #tpu.memory_space<vmem>>, %arg6: memref<2x8x128xf32, #tpu.memory_space<vmem>>, %arg7: memref<2x128xf32, #tpu.memory_space<vmem>>) attributes {dimension_semantics = [#tpu.dimension_semantics<arbitrary>], iteration_bounds = array<i64: 2>, scalar_prefetch = 0 : i64, scratch_operands = 1 : i64, tpu.core_type = #tpu.core_type<tc>, window_params = [{transform_indices = @transform_0, window_bounds = array<i64: 2, 8, 16>}, {pipeline_mode = #tpu.pipeline_mode<synchronous>, transform_indices = @transform_1, window_bounds = array<i64: 16, 128>}, {pipeline_mode = #tpu.pipeline_mode<synchronous>, transform_indices = @transform_2, window_bounds = array<i64: 128, 128>}, {pipeline_mode = #tpu.pipeline_mode<synchronous>, transform_indices = @transform_3, window_bounds = array<i64: 1, 128>}, {pipeline_mode = #tpu.pipeline_mode<synchronous>, transform_indices = @transform_4, window_bounds = array<i64: 2, 128>}, {transform_indices = @transform_5, window_bounds = array<i64: 2, 8, 128>}]} {
    %c0_i32 = arith.constant 0 : i32
    %0 = arith.cmpi eq, %arg0, %c0_i32 : i32
    %1 = arith.extui %0 : i1 to i32
    %c0_i32_0 = arith.constant 0 : i32
    %2 = arith.cmpi ne, %1, %c0_i32_0 : i32
    scf.if %2 {
      %c0_38 = arith.constant 0 : index
      %c0_39 = arith.constant 0 : index
      %78 = vector.load %arg5[%c0_38, %c0_39] : memref<2x128xf32, #tpu.memory_space<vmem>>, vector<2x128xf32>
      %c0_40 = arith.constant 0 : index
      %c0_41 = arith.constant 0 : index
      %79 = vector.load %arg7[%c0_40, %c0_41] : memref<2x128xf32, #tpu.memory_space<vmem>>, vector<2x128xf32>
      tpu.vector_store %arg7[%c0_40, %c0_41], %78 {strides = array<i32>} : memref<2x128xf32, #tpu.memory_space<vmem>>, vector<2x128xf32>,
    } else {
    }
    %c0 = arith.constant 0 : index
    %c0_1 = arith.constant 0 : index
    %3 = vector.load %arg2[%c0, %c0_1] : memref<16x128xf32, #tpu.memory_space<vmem>>, vector<16x128xf32>
    %c0_2 = arith.constant 0 : index
    %c0_3 = arith.constant 0 : index
    %4 = vector.load %arg3[%c0_2, %c0_3] : memref<128x128xf32, #tpu.memory_space<vmem>>, vector<128x128xf32>
    %c0_4 = arith.constant 0 : index
    %c0_5 = arith.constant 0 : index
    %5 = vector.load %arg4[%c0_4, %c0_5] : memref<1x128xf32, #tpu.memory_space<vmem>>, vector<1x128xf32>
    %c0_6 = arith.constant 0 : index
    %c0_7 = arith.constant 0 : index
    %c0_8 = arith.constant 0 : index
    %6 = vector.load %arg1[%c0_6, %c0_7, %c0_8] : memref<2x8x16xf32, #tpu.memory_space<vmem>>, vector<2x8x16xf32>
    %7 = vector.shape_cast %6 : vector<2x8x16xf32> to vector<16x16xf32>
    %cst = arith.constant dense<0.000000e+00> : vector<16x128xf32>
    %8 = tpu.matmul %7, %3, %cst {dimension_numbers = #tpu.dot_dimension_numbers<[1], [0], [0], [1], [0, 0, 1, 1], [], []>} : vector<16x16xf32>, vector<16x128xf32>, vector<16x128xf32> -> vector<16x128xf32>
    %9 = vector.broadcast %5 : vector<1x128xf32> to vector<16x128xf32>
    %10 = arith.addf %8, %9 : vector<16x128xf32>
    %11 = vector.shape_cast %10 : vector<16x128xf32> to vector<2x8x128xf32>
    %c0_9 = arith.constant 0 : index
    %c0_10 = arith.constant 0 : index
    %12 = vector.load %arg7[%c0_9, %c0_10] : memref<2x128xf32, #tpu.memory_space<vmem>>, vector<2x128xf32>
    %13 = vector.extract_strided_slice %11 {offsets = [0, 0, 0], sizes = [2, 1, 128], strides = [1, 1, 1]} : vector<2x8x128xf32> to vector<2x1x128xf32>
    %14 = vector.shape_cast %13 : vector<2x1x128xf32> to vector<2x128xf32>
    %cst_11 = arith.constant dense<0.000000e+00> : vector<2x128xf32>
    %15 = tpu.matmul %12, %4, %cst_11 {dimension_numbers = #tpu.dot_dimension_numbers<[1], [0], [0], [1], [0, 0, 1, 1], [], []>} : vector<2x128xf32>, vector<128x128xf32>, vector<2x128xf32> -> vector<2x128xf32>
    %16 = arith.addf %14, %15 : vector<2x128xf32>
    %17 = math.tanh %16 : vector<2x128xf32>
    %c0_12 = arith.constant 0 : index
    %c0_13 = arith.constant 0 : index
    %c0_14 = arith.constant 0 : index
    %18 = vector.load %arg6[%c0_12, %c0_13, %c0_14] : memref<2x8x128xf32, #tpu.memory_space<vmem>>, vector<2x1x128xf32>
    %19 = vector.shape_cast %18 : vector<2x1x128xf32> to vector<2x128xf32>
    %20 = vector.shape_cast %17 : vector<2x128xf32> to vector<2x1x128xf32>
    tpu.vector_store %arg6[%c0_12, %c0_13, %c0_14], %20 {strides = array<i32>} : memref<2x8x128xf32, #tpu.memory_space<vmem>>, vector<2x1x128xf32>,
    %21 = vector.extract_strided_slice %11 {offsets = [0, 1, 0], sizes = [2, 1, 128], strides = [1, 1, 1]} : vector<2x8x128xf32> to vector<2x1x128xf32>
    %22 = vector.shape_cast %21 : vector<2x1x128xf32> to vector<2x128xf32>
    %cst_15 = arith.constant dense<0.000000e+00> : vector<2x128xf32>
    %23 = tpu.matmul %17, %4, %cst_15 {dimension_numbers = #tpu.dot_dimension_numbers<[1], [0], [0], [1], [0, 0, 1, 1], [], []>} : vector<2x128xf32>, vector<128x128xf32>, vector<2x128xf32> -> vector<2x128xf32>
    %24 = arith.addf %22, %23 : vector<2x128xf32>
    %25 = math.tanh %24 : vector<2x128xf32>
    %c0_16 = arith.constant 0 : index
    %c1 = arith.constant 1 : index
    %c0_17 = arith.constant 0 : index
    %26 = vector.load %arg6[%c0_16, %c1, %c0_17] : memref<2x8x128xf32, #tpu.memory_space<vmem>>, vector<2x1x128xf32>
    %27 = vector.shape_cast %26 : vector<2x1x128xf32> to vector<2x128xf32>
    %28 = vector.shape_cast %25 : vector<2x128xf32> to vector<2x1x128xf32>
    tpu.vector_store %arg6[%c0_16, %c1, %c0_17], %28 {strides = array<i32>} : memref<2x8x128xf32, #tpu.memory_space<vmem>>, vector<2x1x128xf32>,
    %29 = vector.extract_strided_slice %11 {offsets = [0, 2, 0], sizes = [2, 1, 128], strides = [1, 1, 1]} : vector<2x8x128xf32> to vector<2x1x128xf32>
    %30 = vector.shape_cast %29 : vector<2x1x128xf32> to vector<2x128xf32>
    %cst_18 = arith.constant dense<0.000000e+00> : vector<2x128xf32>
    %31 = tpu.matmul %25, %4, %cst_18 {dimension_numbers = #tpu.dot_dimension_numbers<[1], [0], [0], [1], [0, 0, 1, 1], [], []>} : vector<2x128xf32>, vector<128x128xf32>, vector<2x128xf32> -> vector<2x128xf32>
    %32 = arith.addf %30, %31 : vector<2x128xf32>
    %33 = math.tanh %32 : vector<2x128xf32>
    %c0_19 = arith.constant 0 : index
    %c2 = arith.constant 2 : index
    %c0_20 = arith.constant 0 : index
    %34 = vector.load %arg6[%c0_19, %c2, %c0_20] : memref<2x8x128xf32, #tpu.memory_space<vmem>>, vector<2x1x128xf32>
    %35 = vector.shape_cast %34 : vector<2x1x128xf32> to vector<2x128xf32>
    %36 = vector.shape_cast %33 : vector<2x128xf32> to vector<2x1x128xf32>
    tpu.vector_store %arg6[%c0_19, %c2, %c0_20], %36 {strides = array<i32>} : memref<2x8x128xf32, #tpu.memory_space<vmem>>, vector<2x1x128xf32>,
    %37 = vector.extract_strided_slice %11 {offsets = [0, 3, 0], sizes = [2, 1, 128], strides = [1, 1, 1]} : vector<2x8x128xf32> to vector<2x1x128xf32>
    %38 = vector.shape_cast %37 : vector<2x1x128xf32> to vector<2x128xf32>
    %cst_21 = arith.constant dense<0.000000e+00> : vector<2x128xf32>
    %39 = tpu.matmul %33, %4, %cst_21 {dimension_numbers = #tpu.dot_dimension_numbers<[1], [0], [0], [1], [0, 0, 1, 1], [], []>} : vector<2x128xf32>, vector<128x128xf32>, vector<2x128xf32> -> vector<2x128xf32>
    %40 = arith.addf %38, %39 : vector<2x128xf32>
    %41 = math.tanh %40 : vector<2x128xf32>
    %c0_22 = arith.constant 0 : index
    %c3 = arith.constant 3 : index
    %c0_23 = arith.constant 0 : index
    %42 = vector.load %arg6[%c0_22, %c3, %c0_23] : memref<2x8x128xf32, #tpu.memory_space<vmem>>, vector<2x1x128xf32>
    %43 = vector.shape_cast %42 : vector<2x1x128xf32> to vector<2x128xf32>
    %44 = vector.shape_cast %41 : vector<2x128xf32> to vector<2x1x128xf32>
    tpu.vector_store %arg6[%c0_22, %c3, %c0_23], %44 {strides = array<i32>} : memref<2x8x128xf32, #tpu.memory_space<vmem>>, vector<2x1x128xf32>,
    %45 = vector.extract_strided_slice %11 {offsets = [0, 4, 0], sizes = [2, 1, 128], strides = [1, 1, 1]} : vector<2x8x128xf32> to vector<2x1x128xf32>
    %46 = vector.shape_cast %45 : vector<2x1x128xf32> to vector<2x128xf32>
    %cst_24 = arith.constant dense<0.000000e+00> : vector<2x128xf32>
    %47 = tpu.matmul %41, %4, %cst_24 {dimension_numbers = #tpu.dot_dimension_numbers<[1], [0], [0], [1], [0, 0, 1, 1], [], []>} : vector<2x128xf32>, vector<128x128xf32>, vector<2x128xf32> -> vector<2x128xf32>
    %48 = arith.addf %46, %47 : vector<2x128xf32>
    %49 = math.tanh %48 : vector<2x128xf32>
    %c0_25 = arith.constant 0 : index
    %c4 = arith.constant 4 : index
    %c0_26 = arith.constant 0 : index
    %50 = vector.load %arg6[%c0_25, %c4, %c0_26] : memref<2x8x128xf32, #tpu.memory_space<vmem>>, vector<2x1x128xf32>
    %51 = vector.shape_cast %50 : vector<2x1x128xf32> to vector<2x128xf32>
    %52 = vector.shape_cast %49 : vector<2x128xf32> to vector<2x1x128xf32>
    tpu.vector_store %arg6[%c0_25, %c4, %c0_26], %52 {strides = array<i32>} : memref<2x8x128xf32, #tpu.memory_space<vmem>>, vector<2x1x128xf32>,
    %53 = vector.extract_strided_slice %11 {offsets = [0, 5, 0], sizes = [2, 1, 128], strides = [1, 1, 1]} : vector<2x8x128xf32> to vector<2x1x128xf32>
    %54 = vector.shape_cast %53 : vector<2x1x128xf32> to vector<2x128xf32>
    %cst_27 = arith.constant dense<0.000000e+00> : vector<2x128xf32>
    %55 = tpu.matmul %49, %4, %cst_27 {dimension_numbers = #tpu.dot_dimension_numbers<[1], [0], [0], [1], [0, 0, 1, 1], [], []>} : vector<2x128xf32>, vector<128x128xf32>, vector<2x128xf32> -> vector<2x128xf32>
    %56 = arith.addf %54, %55 : vector<2x128xf32>
    %57 = math.tanh %56 : vector<2x128xf32>
    %c0_28 = arith.constant 0 : index
    %c5 = arith.constant 5 : index
    %c0_29 = arith.constant 0 : index
    %58 = vector.load %arg6[%c0_28, %c5, %c0_29] : memref<2x8x128xf32, #tpu.memory_space<vmem>>, vector<2x1x128xf32>
    %59 = vector.shape_cast %58 : vector<2x1x128xf32> to vector<2x128xf32>
    %60 = vector.shape_cast %57 : vector<2x128xf32> to vector<2x1x128xf32>
    tpu.vector_store %arg6[%c0_28, %c5, %c0_29], %60 {strides = array<i32>} : memref<2x8x128xf32, #tpu.memory_space<vmem>>, vector<2x1x128xf32>,
    %61 = vector.extract_strided_slice %11 {offsets = [0, 6, 0], sizes = [2, 1, 128], strides = [1, 1, 1]} : vector<2x8x128xf32> to vector<2x1x128xf32>
    %62 = vector.shape_cast %61 : vector<2x1x128xf32> to vector<2x128xf32>
    %cst_30 = arith.constant dense<0.000000e+00> : vector<2x128xf32>
    %63 = tpu.matmul %57, %4, %cst_30 {dimension_numbers = #tpu.dot_dimension_numbers<[1], [0], [0], [1], [0, 0, 1, 1], [], []>} : vector<2x128xf32>, vector<128x128xf32>, vector<2x128xf32> -> vector<2x128xf32>
    %64 = arith.addf %62, %63 : vector<2x128xf32>
    %65 = math.tanh %64 : vector<2x128xf32>
    %c0_31 = arith.constant 0 : index
    %c6 = arith.constant 6 : index
    %c0_32 = arith.constant 0 : index
    %66 = vector.load %arg6[%c0_31, %c6, %c0_32] : memref<2x8x128xf32, #tpu.memory_space<vmem>>, vector<2x1x128xf32>
    %67 = vector.shape_cast %66 : vector<2x1x128xf32> to vector<2x128xf32>
    %68 = vector.shape_cast %65 : vector<2x128xf32> to vector<2x1x128xf32>
    tpu.vector_store %arg6[%c0_31, %c6, %c0_32], %68 {strides = array<i32>} : memref<2x8x128xf32, #tpu.memory_space<vmem>>, vector<2x1x128xf32>,
    %69 = vector.extract_strided_slice %11 {offsets = [0, 7, 0], sizes = [2, 1, 128], strides = [1, 1, 1]} : vector<2x8x128xf32> to vector<2x1x128xf32>
    %70 = vector.shape_cast %69 : vector<2x1x128xf32> to vector<2x128xf32>
    %cst_33 = arith.constant dense<0.000000e+00> : vector<2x128xf32>
    %71 = tpu.matmul %65, %4, %cst_33 {dimension_numbers = #tpu.dot_dimension_numbers<[1], [0], [0], [1], [0, 0, 1, 1], [], []>} : vector<2x128xf32>, vector<128x128xf32>, vector<2x128xf32> -> vector<2x128xf32>
    %72 = arith.addf %70, %71 : vector<2x128xf32>
    %73 = math.tanh %72 : vector<2x128xf32>
    %c0_34 = arith.constant 0 : index
    %c7 = arith.constant 7 : index
    %c0_35 = arith.constant 0 : index
    %74 = vector.load %arg6[%c0_34, %c7, %c0_35] : memref<2x8x128xf32, #tpu.memory_space<vmem>>, vector<2x1x128xf32>
    %75 = vector.shape_cast %74 : vector<2x1x128xf32> to vector<2x128xf32>
    %76 = vector.shape_cast %73 : vector<2x128xf32> to vector<2x1x128xf32>
    tpu.vector_store %arg6[%c0_34, %c7, %c0_35], %76 {strides = array<i32>} : memref<2x8x128xf32, #tpu.memory_space<vmem>>, vector<2x1x128xf32>,
    %c0_36 = arith.constant 0 : index
    %c0_37 = arith.constant 0 : index
    %77 = vector.load %arg7[%c0_36, %c0_37] : memref<2x128xf32, #tpu.memory_space<vmem>>, vector<2x128xf32>
    tpu.vector_store %arg7[%c0_36, %c0_37], %73 {strides = array<i32>} : memref<2x128xf32, #tpu.memory_space<vmem>>, vector<2x128xf32>,
    return
  }
  func.func @transform_0(%arg0: i32) -> (i32, i32, i32) {
    %c0_i32 = arith.constant 0 : i32
    %c0_i32_0 = arith.constant 0 : i32
    %c0_i32_1 = arith.constant 0 : i32
    return %c0_i32, %arg0, %c0_i32_0 : i32, i32, i32
  }
  func.func @transform_1(%arg0: i32) -> (i32, i32) {
    %c0_i32 = arith.constant 0 : i32
    %c0_i32_0 = arith.constant 0 : i32
    %c0_i32_1 = arith.constant 0 : i32
    return %c0_i32, %c0_i32_0 : i32, i32
  }
  func.func @transform_2(%arg0: i32) -> (i32, i32) {
    %c0_i32 = arith.constant 0 : i32
    %c0_i32_0 = arith.constant 0 : i32
    %c0_i32_1 = arith.constant 0 : i32
    return %c0_i32, %c0_i32_0 : i32, i32
  }
  func.func @transform_3(%arg0: i32) -> (i32, i32) {
    %c0_i32 = arith.constant 0 : i32
    %c0_i32_0 = arith.constant 0 : i32
    %c0_i32_1 = arith.constant 0 : i32
    return %c0_i32, %c0_i32_0 : i32, i32
  }
  func.func @transform_4(%arg0: i32) -> (i32, i32) {
    %c0_i32 = arith.constant 0 : i32
    %c0_i32_0 = arith.constant 0 : i32
    %c0_i32_1 = arith.constant 0 : i32
    return %c0_i32, %c0_i32_0 : i32, i32
  }
  func.func @transform_5(%arg0: i32) -> (i32, i32, i32) {
    %c0_i32 = arith.constant 0 : i32
    %c0_i32_0 = arith.constant 0 : i32
    %c0_i32_1 = arith.constant 0 : i32
    return %c0_i32, %arg0, %c0_i32_0 : i32, i32, i32
  }
}

</mosaic_0001>

<bundles_post_ra>
// kernel: tpu_custom_call.1
= control target key start
LH: loop header
LB: loop body
LE: loop exit
PB: predicated region body
PF: predicated region fallthrough
CT: control target
= control target key end

     0   :  { %10 = vsyncpa [#allocation4], 0  ;;  %s2593_s0 = inlined_call_operand.hbm [shape: f32[2,16,16], index: 0, kind: input, shape index: {}]   ;;  %s2594_s1 = inlined_call_operand.hbm [shape: f32[16,128], index: 1, kind: input, shape index: {}]   ;;  %s2595_s2 = inlined_call_operand.hbm [shape: f32[128,128], index: 2, kind: input, shape index: {}]   ;;  %s2596_s3 = inlined_call_operand.vmem [shape: f32[1,128], index: 3, kind: input, shape index: {}]   ;;  %s2597_s4 = inlined_call_operand.vmem [shape: f32[2,128], index: 4, kind: input, shape index: {}]   ;;  %s2598_s5 = inlined_call_operand.hbm [shape: f32[2,16,128], index: 5, kind: output, shape index: {}]  }
   0x1   :  { %12 = vsyncpa [#allocation4 + $0x1], 0 }
   0x2   :  { %13 = vsyncpa [#allocation7], 0 }
   0x3   :  { %14 = vsyncpa [#allocation5], 0 }
   0x4   :  { %16 = vsyncpa [#allocation5 + $0x1], 0  ;;  %s2138_s18 = smov 0   ;;  %s2140_s19 = smov 0  }
   0x5   :  { %s2142_s20 = smov 0   ;;  %s2144_s21 = smov 0  }
   0x6 LB: > { %s2159_s22 = sadd.s32 4294967295, %s2093_s21   ;;  %s1186_s23 = sadd.s32 4294967294, %s2093_s21   ;;  %s2093_s21 = sphi %s2144_s21, %s2627_s21   ;;  %s2089_s20 = sphi %s2142_s20, %s2626_s20   ;;  %s2085_s19 = sphi %s2140_s19, %s2625_s19   ;;  %s2081_s18 = sphi %s2138_s18, %s2624_s18  }
   0x7   : > { %s2163_s24 = sadd.s32 1, %s2093_s21   ;;  %s29_s25 = sadd.s32 1, %s2089_s20 }
   0x8   : > { %s26_s26 = ssub.s32 %s2093_s21, %s2163_s24  ;;  %p36_p0 = scmp.ne.s32.totalorder %s2089_s20, %s2085_s19 }
   0x9   : > { %p27_p1 = scmp.eq.s32.totalorder %s26_s26, 0  ;;  %p37_p2 = scmp.eq.s32.totalorder %s2093_s21, 0 }
   0xa   : > { %p42_p3 = scmp.ne.s32.totalorder %s2085_s19, %s2081_s18  ;;  %p2599_p4 = scmp.eq.s32.totalorder %s2159_s22, 0 }
   0xb   : > { %s2175_s27 = scalar_select %p27_p1, %s2089_s20, %s29_s25  }
   0xc   : > { %p2177_p5 = por %p37_p2, %p36_p0  ;;  %p2183_p6 = por %p2599_p4, %p42_p3 }
   0xd   : > { %p150_p7 = scmp.eq.s32.totalorder %s2159_s22, 1  ;;  %p156_p8 = scmp.eq.s32.totalorder %s1186_s23, 1 }
   0xe   : > { %s2605_s28 = scalar_select %p2177_p5, 1, 0 }
   0xf   : > { %s2606_s29 = scalar_select %p2183_p6, 1, 0 }
  0x10   : > { %p1187_p9 = scmp.ge.s32.totalorder %s2093_s21, 1  ;;  %p163_p10 = scmp.lt.s32.totalorder %s2093_s21, 3 }
  0x11   : > { %p2190_p11 = por %p150_p7, %p36_p0  ;;  %p2194_p12 = por %p156_p8, %p42_p3 }
  0x12   : > { %p2198_p13 = pnand %p1187_p9, %p163_p10  ;;  %s2095_s8 = smov [#allocation6]  }
  0x13   : > { %s2607_s30 = scalar_select %p2190_p11, 1, 0 }
  0x14   : > { %s2608_s6 = scalar_select %p2194_p12, 1, 0 }
  0x15   : > { %s2609_s7 = scalar_select %p2198_p13, 1, 0 }
  0x16   : > { %p1841_p2 = pneg %p2198_p13  ;;  %s175_s9 = sshll.u32 %s2095_s8, 4  ;;  %s176_s9 = int_to_ptr.vmem [resolvable:$true] %s175_s9 }
  0x17   : > { %s2096_s11 = smov [#allocation8]   ;;  %s1937_s15 = scalar_lea.hbm %s2594_s1, 256 }
  0x18   : > { %p2207_p0 = pnand %p1841_p2, %p2599_p4  ;;  %s188_s12 = sshll.u32 %s2096_s11, 4  ;;  %s189_s12 = int_to_ptr.vmem [resolvable:$true] %s188_s12 }
  0x19   : > { %p1938_p8 = scmp.ne.s32.totalorder %s2594_s1, %s1937_s15  ;;  %p1944_p3 = scmp.lt.u32.totalorder %s1937_s15, %s2594_s1 }
  0x1a   : > { %p1939_p9 = pneg %p2207_p0 }
  0x1c   : > { %p1940_p10 = pnand %p1939_p9, %p1938_p8 }
  0x1e   : > { %p1941_p2 = pneg %p1940_p10 }
  0x20   : > { %p1946_p1 = pnand %p1944_p3, %p1941_p2 }
  0x22   : > { %1949 = shalt.err (!%p1946_p1)
}
  0x23   : > { %s1950_s26 = scalar_lea.vmem %s176_s9, 256  ;;  %p1958_p11 = scmp.lt.s32.totalorder %s176_s9, %s176_s9 }
  0x24   : > { %p1951_p4 = scmp.ne.s32.totalorder %s176_s9, %s1950_s26  ;;  %p1959_p6 = scmp.lt.s32.totalorder %s1950_s26, %s1950_s26 }
  0x26   : > { %p1953_p7 = pnand %p1951_p4, %p1939_p9  ;;  %p1960_p13 = por %p1959_p6, %p1958_p11 }
  0x28   : > { %p1954_p12 = pneg %p1953_p7 }
  0x2a   : > { %p1961_p5 = pnand %p1960_p13, %p1954_p12 }
  0x2c   : > { %1964 = shalt.err (!%p1961_p5)
}
  0x2d   : > { %s2604_s8 = smov 128   ;;  %s2098_s11 = smov 8  }
  0x2e   : > { %1844 = dma.hbm_to_vmem [thread:$0]  (!%p2207_p0), %s2594_s1, 256, %s176_s9, [#allocation7], %s2604_s8, %s2604_s8, %s2098_s11  }
  0x2f   : > { %p2611_p4 = scmp.ne.s32.totalorder %s2605_s28, 0  ;;  %p2612_p1 = scmp.lt.s32.totalorder %s2093_s21, 2 }
  0x30   : > { %s1965_s23 = scalar_lea.hbm %s2595_s2, 2048 }
  0x31   : > { %p2242_p3 = pnand %p2612_p1, %p2611_p4  ;;  %p1966_p5 = scmp.ne.s32.totalorder %s2595_s2, %s1965_s23 }
  0x32   : > { %p1972_p12 = scmp.lt.u32.totalorder %s1965_s23, %s2595_s2 }
  0x33   : > { %s2613_s15 = scalar_select %p2242_p3, 1, 0 }
  0x34   : > { %p1968_p6 = pnand %p1966_p5, %p1939_p9 }
  0x36   : > { %p1969_p11 = pneg %p1968_p6 }
  0x38   : > { %p1974_p13 = pnand %p1972_p12, %p1969_p11 }
  0x3a   : > { %1977 = shalt.err (!%p1974_p13)
}
  0x3b   : > { %s1978_s13 = scalar_lea.vmem %s189_s12, 2048  ;;  %p1986_p2 = scmp.lt.s32.totalorder %s189_s12, %s189_s12 }
  0x3c   : > { %p1979_p7 = scmp.ne.s32.totalorder %s189_s12, %s1978_s13  ;;  %p1987_p4 = scmp.lt.s32.totalorder %s1978_s13, %s1978_s13 }
  0x3e   : > { %p1981_p8 = pnand %p1979_p7, %p1939_p9  ;;  %p1988_p1 = por %p1987_p4, %p1986_p2 }
  0x40   : > { %p1982_p10 = pneg %p1981_p8 }
  0x42   : > { %p1989_p3 = pnand %p1988_p1, %p1982_p10 }
  0x44   : > { %1992 = shalt.err (!%p1989_p3)
}
  0x45   : > { %1847 = dma.hbm_to_vmem [thread:$0]  (!%p2207_p0), %s2595_s2, 2048, %s189_s12, [#allocation7], %s2604_s8, %s2604_s8, %s2098_s11  }
  0x46   : > { %s208_s17 = sand.u32 1, %s2089_s20   ;;  %s1192_s25 = sshll.u32 %s2093_s21, 7 }
  0x47   : > { %s1191_s23 = sshll.u32 %s208_s17, 4  ;;  %s2274_s28 = scalar_lea.hbm %s2593_s0, %s1192_s25 }
  0x48   : > { %s212_s10 = scalar_lea.vmem [#allocation3], %s1191_s23  ;;  %s2278_s14 = scalar_lea.sflag [#allocation4], %s208_s17 }
  0x49   : > { %s218_s13 = sshll.u32 %s212_s10, 4  ;;  %s1993_s16 = scalar_lea.hbm %s2274_s28, 256  ;;  %s2276_s13 = int_to_ptr.vmem [resolvable:$true] %s218_s13 }
  0x4a   : > { %p1994_p0 = scmp.ne.s32.totalorder %s2274_s28, %s1993_s16  ;;  %p2614_p9 = scmp.ne.s32.totalorder %s2613_s15, 0 }
  0x4b   : > { %s1998_s26 = scalar_lea.hbm %s2593_s0, 512  ;;  %p1999_p11 = scmp.lt.u32.totalorder %s2274_s28, %s2593_s0 }
  0x4c   : > { %p1995_p3 = pneg %p2614_p9  ;;  %p2000_p12 = scmp.lt.u32.totalorder %s1998_s26, %s1993_s16 }
  0x4d   : > { %p2002_p7 = scmp.lt.u32.totalorder %s1993_s16, %s2274_s28 }
  0x4e   : > { %p1996_p5 = pnand %p1995_p3, %p1994_p0  ;;  %p2001_p13 = por %p2000_p12, %p1999_p11 }
  0x50   : > { %p1997_p6 = pneg %p1996_p5  ;;  %p2003_p8 = por %p2002_p7, %p2001_p13 }
  0x52   : > { %p2004_p10 = pnand %p2003_p8, %p1997_p6 }
  0x54   : > { %2007 = shalt.err (!%p2004_p10)
}
  0x55   : > { %s2008_s17 = scalar_lea.vmem %s2276_s13, 256  ;;  %s2099_s23 = smov [#allocation3]  }
  0x56   : > { %p2009_p2 = scmp.ne.s32.totalorder %s2276_s13, %s2008_s17  ;;  %s2013_s10 = sshll.u32 %s2099_s23, 4  ;;  %s2014_s10 = int_to_ptr.vmem [resolvable:$false] %s2013_s10 }
  0x57   : > { %s2015_s8 = scalar_lea.vmem %s2014_s10, 512  ;;  %p2016_p0 = scmp.lt.s32.totalorder %s2276_s13, %s2014_s10 }
  0x58   : > { %p2011_p4 = pnand %p2009_p2, %p1995_p3  ;;  %p2017_p5 = scmp.lt.s32.totalorder %s2015_s8, %s2008_s17 }
  0x5a   : > { %p2012_p1 = pneg %p2011_p4  ;;  %p2018_p11 = por %p2017_p5, %p2016_p0 }
  0x5c   : > { %p2019_p12 = pnand %p2018_p11, %p2012_p1 }
  0x5e   : > { %2022 = shalt.err (!%p2019_p12)
}
  0x5f   : > { %s2100_s16 = smov 256   ;;  %s2615_s12 = smov 128  }
  0x60   : > { %1851 = dma.hbm_to_vmem [thread:$0]  (!%p2614_p9), %s2274_s28, 256, %s2276_s13, %s2278_s14, %s2100_s16, %s2615_s12, %s2098_s11  }
  0x61   : > { %p2616_p3 = scmp.ne.s32.totalorder %s2609_s7, 0 }
  0x62   : > { %s2311_s25 = sand.u32 (!%p2616_p3), 1, %s2085_s19   ;;  %p2617_p6 = scmp.ne.s32.totalorder (!%p2616_p3), %s2606_s29, 0 }
  0x63   : > { %230 = sbr.rel (%p2616_p3) target bundleno = 2012 (0x7dc), region = 40  ;;  %s1194_s26 = sshll.u32 (!%p2616_p3), %s2311_s25, 4 }
  0x64   : > { %s233_s9 = scalar_lea.sflag (!%p2616_p3), [#allocation4], %s2311_s25  ;;  %s2315_s17 = scalar_lea.vmem (!%p2616_p3), [#allocation3], %s1194_s26 }
  0x6a   : > { %2068 = dma.done.wait (%p2617_p6), %s233_s9, 256  }
  0x6b   : > { %2070 = vsyncadd (%p2617_p6), %s233_s9, 4294967040  ;;  %p2618_p9 = scmp.eq.s32.totalorder %s2159_s22, 0 }
  0x6d   : > { %2072 = dma.done.wait (%p2618_p9), [#allocation7], 2304   ;;  %p2619_p13 = pmov %p2618_p9 }
  0x6e   : > { %s2325_s7 = scalar_lea.vmem [#allocation9], %s1194_s26  ;;  %p2620_p7 = scmp.ne.s32.totalorder %s2159_s22, 0 }
  0x6f   : > { %2074 = vsyncadd (%p2619_p13), [#allocation7], 4294964992  ;;  %v275_v0 = vld [vmem:[%s2597_s4] sm:$0x3] (!%p2620_p7) }
  0x70   : > { %274 = sbr.rel (%p2620_p7) target bundleno = 119 (0x77), region = 56  ;;  %276 = vst [vmem:[#allocation2] sm:$0x3] (!%p2620_p7), %v275_v0 }
  0x77 PF: > { %v279_v1 = vld [vmem:[#allocation8] sm:$0xff]  ;;  %v280_v2 = vld [vmem:[#allocation8 + $0x8] sm:$0xff]  ;;  %v281_v3 = vld [vmem:[#allocation8 + $0x10] sm:$0xff]  ;;  %v2101_v4 = vmov 0.0|0.0   ;;  %vm2102_vm0 = vmmov 0   ;;  %v2103_v7 = vmov 0.0  }
  0x78   : > { %1637 = vmatprep.subr.bf16.mxu1 %v2101_v4  ;;  %v2333_v5 = vpack.c.bf16 %v280_v2, %v279_v1  ;;  %v282_v6 = vld [vmem:[#allocation8 + $0x18] sm:$0xff]  ;;  %1385 = vmatprep.mubr.msk.f32.mxu1 %vm2102_vm0, %v2103_v7  ;;  %v283_v9 = vld [vmem:[#allocation8 + $0x20] sm:$0xff]  ;;  %vm304_vm1 = vcmask 130048   ;;  %v284_v10 = vld [vmem:[#allocation8 + $0x28] sm:$0xff]  ;;  %vm470_vm2 = vcmask 1041409   ;;  %s1203_s13 = sshll.u32 %s2159_s22, 7 }
  0x79   : > { %v2338_v8 = vpack.c.bf16 %v282_v6, %v281_v3  ;;  %v277_v11 = vld [vmem:[#allocation6] sm:$0xff]  ;;  %v278_v12 = vld [vmem:[#allocation6 + $0x8] sm:$0xff]  ;;  %v2344_v15 = vpack.c.bf16 %v284_v10, %v283_v9  ;;  %v287_v20 = vld [vmem:[#allocation8 + $0x40] sm:$0xff]  ;;  %s1094_s14 = sshll.u32 %s2325_s7, 4  ;;  %s2545_s8 = scalar_lea.hbm %s2598_s5, %s1203_s13  ;;  %s2547_s14 = int_to_ptr.vmem [resolvable:$true] %s1094_s14 }
  0x7a   : > { %1639 = vmatpush3.bf16.msra.mxu1 %v2333_v5  ;;  %v1633_v13 = vpack.c.bf16 %v278_v12, %v277_v11  ;;  %v296_v14 = vld [vmem:[%s2315_s17] sm:$0xff]  ;;  %v286_v17 = vld [vmem:[#allocation8 + $0x38] sm:$0xff]  ;;  %v288_v21 = vld [vmem:[#allocation8 + $0x48] sm:$0xff]  ;;  %s1082_s16 = scalar_lea.sflag [#allocation5], %s2311_s25  ;;  %s2023_s12 = scalar_lea.vmem %s2547_s14, 256 }
  0x7b   : > { %1640 = vmatprep.subr.bf16.mxu1 %v2101_v4  ;;  %1350 = vmatprep.mubr.msk.f32.mxu0 %vm304_vm1, %v296_v14  ;;  %v285_v16 = vld [vmem:[#allocation8 + $0x30] sm:$0xff]  ;;  %v297_v18 = vld [vmem:[%s2315_s17 + $0x8] sm:$0xff]  ;;  %v2359_v22 = vpack.c.bf16 %v288_v21, %v287_v20  ;;  %v291_v26 = vld [vmem:[#allocation8 + $0x60] sm:$0xff]  ;;  %p2024_p8 = scmp.ne.s32.totalorder %s2547_s14, %s2023_s12  ;;  %p2621_p10 = scmp.ne.s32.totalorder %s2607_s30, 0 }
  0x7c   : > { %1634 = vmatprep.subr.bf16.mxu0 %v1633_v13  ;;  %v2350_v19 = vpack.c.bf16 %v286_v17, %v285_v16  ;;  %v289_v23 = vld [vmem:[#allocation8 + $0x50] sm:$0xff]  ;;  %v290_v24 = vld [vmem:[#allocation8 + $0x58] sm:$0xff]  ;;  %v292_v27 = vld [vmem:[#allocation8 + $0x68] sm:$0xff]  ;;  %s2104_s22 = smov [#allocation9]  }
  0x7d   : > { %1636 = vmatpush3.bf16.msra.mxu0 %v1633_v13  ;;  %v2365_v25 = vpack.c.bf16 %v290_v24, %v289_v23  ;;  %v2371_v28 = vpack.c.bf16 %v292_v27, %v291_v26  ;;  %v293_v29 = vld [vmem:[#allocation8 + $0x70] sm:$0xff]  ;;  %v294_v30 = vld [vmem:[#allocation8 + $0x78] sm:$0xff]  ;;  %v386_v32 = vld [vmem:[#allocation2] sm:$0x3]  ;;  %p2025_p2 = pnand %p2024_p8, %p2621_p10  ;;  %s2027_s26 = sshll.u32 %s2104_s22, 4  ;;  %s2028_s26 = int_to_ptr.vmem [resolvable:$false] %s2027_s26 }
  0x7e   : > { %1642 = vmatpush3.bf16.msra.mxu1 %v2338_v8  ;;  %1661 = vmatprep.subr.bf16.mxu0 %v2101_v4  ;;  %v2377_v31 = vpack.c.bf16 %v294_v30, %v293_v29  ;;  %v1199_v35 = vld [vmem:[%s2596_s3] ss:$0 sm:$0xff]  ;;  %s2029_s9 = scalar_lea.vmem %s2028_s26, 512  ;;  %p2030_p1 = scmp.lt.s32.totalorder %s2547_s14, %s2028_s26 }
  0x7f   : > { %1643 = vmatprep.subr.bf16.mxu1 %v2101_v4  ;;  %p2026_p4 = pneg %p2025_p2  ;;  %p2031_p0 = scmp.lt.s32.totalorder %s2029_s9, %s2023_s12 }
  0x80   : > { %1351 = vmatmul.mubr.msk.f32.vlgmr.msra.gmra.mrb[0].mxu0 %vm304_vm1, %v297_v18 }
  0x81   : > { %1663 = vmatpush3.bf16.msra.mxu0 %v2333_v5  ;;  %1420 = vmatprep.mubr.msk.f32.mxu0 %vm2102_vm0, %v2103_v7  ;;  %p2032_p5 = por %p2031_p0, %p2030_p1 }
  0x82   : > { %1645 = vmatpush3.bf16.msra.mxu1 %v2344_v15  ;;  %1664 = vmatprep.subr.bf16.mxu0 %v2101_v4 }
  0x83   : > { %1646 = vmatprep.subr.bf16.mxu1 %v2101_v4  ;;  %p2033_p11 = pnand %p2032_p5, %p2026_p4 }
  0x85   : > { %1666 = vmatpush3.bf16.msra.mxu0 %v2338_v8 }
  0x86   : > { %1648 = vmatpush3.bf16.msra.mxu1 %v2350_v19  ;;  %1667 = vmatprep.subr.bf16.mxu0 %v2101_v4 }
  0x87   : > { %1649 = vmatprep.subr.bf16.mxu1 %v2101_v4 }
  0x89   : > { %1669 = vmatpush3.bf16.msra.mxu0 %v2344_v15 }
  0x8a   : > { %1651 = vmatpush3.bf16.msra.mxu1 %v2359_v22  ;;  %1670 = vmatprep.subr.bf16.mxu0 %v2101_v4 }
  0x8b   : > { %1652 = vmatprep.subr.bf16.mxu1 %v2101_v4 }
  0x8d   : > { %1672 = vmatpush3.bf16.msra.mxu0 %v2350_v19 }
  0x8e   : > { %1654 = vmatpush3.bf16.msra.mxu1 %v2365_v25  ;;  %1673 = vmatprep.subr.bf16.mxu0 %v2101_v4 }
  0x8f   : > { %1655 = vmatprep.subr.bf16.mxu1 %v2101_v4 }
  0x91   : > { %1675 = vmatpush3.bf16.msra.mxu0 %v2359_v22 }
  0x92   : > { %1657 = vmatpush3.bf16.msra.mxu1 %v2371_v28  ;;  %1676 = vmatprep.subr.bf16.mxu0 %v2101_v4 }
  0x93   : > { %1658 = vmatprep.subr.bf16.mxu1 %v2101_v4 }
  0x95   : > { %1678 = vmatpush3.bf16.msra.mxu0 %v2365_v25 }
  0x96   : > { %1660 = vmatpush3.bf16.msra.mxu1 %v2377_v31  ;;  %1679 = vmatprep.subr.bf16.mxu0 %v2101_v4 }
  0x97   : > { %1685 = vmatprep.subr.bf16.mxu1 %v2101_v4 }
  0x99   : > { %1386 = vmatmul.mubr.f32.vlgmr.msra.gmra.mrb[0].mxu1 %v386_v32  ;;  %1681 = vmatpush3.bf16.msra.mxu0 %v2371_v28 }
  0x9a   : > { %1687 = vmatpush3.bf16.msra.mxu1 %v2333_v5  ;;  %1455 = vmatprep.mubr.msk.f32.mxu1 %vm2102_vm0, %v2103_v7 }
  0x9b   : > { %1688 = vmatprep.subr.bf16.mxu1 %v2101_v4  ;;  %1682 = vmatprep.subr.bf16.mxu0 %v2101_v4 }
  0x9d   : > { %1684 = vmatpush3.bf16.msra.mxu0 %v2377_v31 }
  0x9e   : > { %1690 = vmatpush3.bf16.msra.mxu1 %v2338_v8  ;;  %1709 = vmatprep.subr.bf16.mxu0 %v2101_v4 }
  0x9f   : > { %1691 = vmatprep.subr.bf16.mxu1 %v2101_v4 }
  0xa2   : > { %1693 = vmatpush3.bf16.msra.mxu1 %v2344_v15 }
  0xa3   : > { %1694 = vmatprep.subr.bf16.mxu1 %v2101_v4 }
  0xa6   : > { %1696 = vmatpush3.bf16.msra.mxu1 %v2350_v19 }
  0xa7   : > { %1697 = vmatprep.subr.bf16.mxu1 %v2101_v4 }
  0xaa   : > { %1699 = vmatpush3.bf16.msra.mxu1 %v2359_v22 }
  0xab   : > { %1700 = vmatprep.subr.bf16.mxu1 %v2101_v4 }
  0xae   : > { %1702 = vmatpush3.bf16.msra.mxu1 %v2365_v25 }
  0xaf   : > { %1703 = vmatprep.subr.bf16.mxu1 %v2101_v4 }
  0xb2   : > { %1705 = vmatpush3.bf16.msra.mxu1 %v2371_v28 }
  0xb3   : > { %1706 = vmatprep.subr.bf16.mxu1 %v2101_v4 }
  0xb6   : > { %1708 = vmatpush3.bf16.msra.mxu1 %v2377_v31 }
  0xb7   : > { %1733 = vmatprep.subr.bf16.mxu1 %v2101_v4 }
 0x153   : > { %v1352_v33 = vpop.f32.mrb[0].mxu0 }
 0x154   : > { %v377_v34 = vpop.f32.mrb[1].mxu0  ;;  %v2413_v37 = vadd.f32 %v1352_v33, %v1199_v35 }
 0x155   : > { %v2411_v36 = vadd.f32 %v1199_v35, %v377_v34 }
 0x16c   : > { %v453_v38 = vpop.f32.mrb[0].mxu1 }
 0x16d   : > { %v458_v39 = vrot.slane %v453_v38, 1  ;;  %v461_v40 = vadd.f32 %v453_v38, %v2411_v36  ;;  %v1387_v41 = vpop.f32.mrb[1].mxu1 }
 0x16f   : > { %v462_v42 = vadd.f32 %v458_v39, %v2413_v37  ;;  %1905 = vtanh.f32 %v461_v40 }
 0x171   : > { %1907 = vtanh.f32 %v462_v42 }
 0x179   : > { %v1906_v43 = vpop.eup %1905 }
 0x17a   : > { %465 = vst [vmem:[%s2325_s7] sm:$0x1] %v1906_v43 }
 0x17b   : > { %v1908_v44 = vpop.eup %1907 }
 0x17c   : > { %466 = vst [vmem:[%s2325_s7 + $0x8] sm:$0x1] %v1908_v44  ;;  %v469_v45 = vrot.slane %v1908_v44, 7 }
 0x17e   : > { %v471_v46 = vsel %vm470_vm2, %v469_v45, %v1906_v43 }
 0x17f   : > { %1421 = vmatmul.mubr.f32.vlgmr.msra.gmra.mrb[2].mxu0 %v471_v46 }
 0x180   : > { %1711 = vmatpush3.bf16.msra.mxu0 %v2333_v5  ;;  %1490 = vmatprep.mubr.msk.f32.mxu0 %vm2102_vm0, %v2103_v7 }
 0x181   : > { %1712 = vmatprep.subr.bf16.mxu0 %v2101_v4 }
 0x184   : > { %1714 = vmatpush3.bf16.msra.mxu0 %v2338_v8 }
 0x185   : > { %1715 = vmatprep.subr.bf16.mxu0 %v2101_v4 }
 0x188   : > { %1717 = vmatpush3.bf16.msra.mxu0 %v2344_v15 }
 0x189   : > { %1718 = vmatprep.subr.bf16.mxu0 %v2101_v4 }
 0x18c   : > { %1720 = vmatpush3.bf16.msra.mxu0 %v2350_v19 }
 0x18d   : > { %1721 = vmatprep.subr.bf16.mxu0 %v2101_v4 }
 0x190   : > { %1723 = vmatpush3.bf16.msra.mxu0 %v2359_v22 }
 0x191   : > { %1724 = vmatprep.subr.bf16.mxu0 %v2101_v4 }
 0x194   : > { %1726 = vmatpush3.bf16.msra.mxu0 %v2365_v25 }
 0x195   : > { %1727 = vmatprep.subr.bf16.mxu0 %v2101_v4 }
 0x198   : > { %1729 = vmatpush3.bf16.msra.mxu0 %v2371_v28 }
 0x199   : > { %1730 = vmatprep.subr.bf16.mxu0 %v2101_v4 }
 0x19c   : > { %1732 = vmatpush3.bf16.msra.mxu0 %v2377_v31 }
 0x19d   : > { %1757 = vmatprep.subr.bf16.mxu0 %v2101_v4 }
 0x252   : > { %v539_v47 = vpop.f32.mrb[2].mxu0 }
 0x253   : > { %v544_v48 = vrot.slane %v539_v47, 7  ;;  %v548_v49 = vadd.f32 %v539_v47, %v2413_v37  ;;  %v1422_v50 = vpop.f32.mrb[3].mxu0 }
 0x255   : > { %v547_v51 = vadd.f32 %v544_v48, %v2411_v36  ;;  %1909 = vtanh.f32 %v548_v49 }
 0x257   : > { %1911 = vtanh.f32 %v547_v51 }
 0x25f   : > { %v1910_v52 = vpop.eup %1909 }
 0x260   : > { %552 = vst [vmem:[%s2325_s7 + $0x8] sm:$0x2] %v1910_v52 }
 0x261   : > { %v1912_v53 = vpop.eup %1911 }
 0x262   : > { %551 = vst [vmem:[%s2325_s7] sm:$0x2] %v1912_v53  ;;  %v555_v54 = vrot.slane %v1912_v53, 1 }
 0x264   : > { %v556_v55 = vsel %vm470_vm2, %v1910_v52, %v555_v54 }
 0x265   : > { %1456 = vmatmul.mubr.f32.vlgmr.msra.gmra.mrb[2].mxu1 %v556_v55 }
 0x266   : > { %1735 = vmatpush3.bf16.msra.mxu1 %v2333_v5  ;;  %1525 = vmatprep.mubr.msk.f32.mxu1 %vm2102_vm0, %v2103_v7 }
 0x267   : > { %1736 = vmatprep.subr.bf16.mxu1 %v2101_v4 }
 0x26a   : > { %1738 = vmatpush3.bf16.msra.mxu1 %v2338_v8 }
 0x26b   : > { %1739 = vmatprep.subr.bf16.mxu1 %v2101_v4 }
 0x26e   : > { %1741 = vmatpush3.bf16.msra.mxu1 %v2344_v15 }
 0x26f   : > { %1742 = vmatprep.subr.bf16.mxu1 %v2101_v4 }
 0x272   : > { %1744 = vmatpush3.bf16.msra.mxu1 %v2350_v19 }
 0x273   : > { %1745 = vmatprep.subr.bf16.mxu1 %v2101_v4 }
 0x276   : > { %1747 = vmatpush3.bf16.msra.mxu1 %v2359_v22 }
 0x277   : > { %1748 = vmatprep.subr.bf16.mxu1 %v2101_v4 }
 0x27a   : > { %1750 = vmatpush3.bf16.msra.mxu1 %v2365_v25 }
 0x27b   : > { %1751 = vmatprep.subr.bf16.mxu1 %v2101_v4 }
 0x27e   : > { %1753 = vmatpush3.bf16.msra.mxu1 %v2371_v28 }
 0x27f   : > { %1754 = vmatprep.subr.bf16.mxu1 %v2101_v4 }
 0x282   : > { %1756 = vmatpush3.bf16.msra.mxu1 %v2377_v31 }
 0x283   : > { %1781 = vmatprep.subr.bf16.mxu1 %v2101_v4 }
 0x338   : > { %v624_v56 = vpop.f32.mrb[2].mxu1 }
 0x339   : > { %v629_v57 = vrot.slane %v624_v56, 6  ;;  %v630_v58 = vrot.slane %v624_v56, 7  ;;  %v1457_v59 = vpop.f32.mrb[3].mxu1 }
 0x33b   : > { %v633_v60 = vadd.f32 %v629_v57, %v2411_v36  ;;  %v634_v61 = vadd.f32 %v630_v58, %v2413_v37 }
 0x33d   : > { %1913 = vtanh.f32 %v633_v60 }
 0x33e   : > { %1915 = vtanh.f32 %v634_v61 }
 0x347   : > { %v1914_v62 = vpop.eup %1913 }
 0x348   : > { %v1916_v63 = vpop.eup %1915  ;;  %637 = vst [vmem:[%s2325_s7] sm:$0x4] %v1914_v62  ;;  %v641_v0 = vrot.slane %v1914_v62, 2 }
 0x349   : > { %638 = vst [vmem:[%s2325_s7 + $0x8] sm:$0x4] %v1916_v63  ;;  %v642_v1 = vrot.slane %v1916_v63, 1 }
 0x34b   : > { %v643_v2 = vsel %vm470_vm2, %v642_v1, %v641_v0 }
 0x34c   : > { %1491 = vmatmul.mubr.f32.vlgmr.msra.gmra.mrb[4].mxu0 %v643_v2 }
 0x34d   : > { %1759 = vmatpush3.bf16.msra.mxu0 %v2333_v5  ;;  %1560 = vmatprep.mubr.msk.f32.mxu0 %vm2102_vm0, %v2103_v7 }
 0x34e   : > { %1760 = vmatprep.subr.bf16.mxu0 %v2101_v4 }
 0x351   : > { %1762 = vmatpush3.bf16.msra.mxu0 %v2338_v8 }
 0x352   : > { %1763 = vmatprep.subr.bf16.mxu0 %v2101_v4 }
 0x355   : > { %1765 = vmatpush3.bf16.msra.mxu0 %v2344_v15 }
 0x356   : > { %1766 = vmatprep.subr.bf16.mxu0 %v2101_v4 }
 0x359   : > { %1768 = vmatpush3.bf16.msra.mxu0 %v2350_v19 }
 0x35a   : > { %1769 = vmatprep.subr.bf16.mxu0 %v2101_v4 }
 0x35d   : > { %1771 = vmatpush3.bf16.msra.mxu0 %v2359_v22 }
 0x35e   : > { %1772 = vmatprep.subr.bf16.mxu0 %v2101_v4 }
 0x361   : > { %1774 = vmatpush3.bf16.msra.mxu0 %v2365_v25 }
 0x362   : > { %1775 = vmatprep.subr.bf16.mxu0 %v2101_v4 }
 0x365   : > { %1777 = vmatpush3.bf16.msra.mxu0 %v2371_v28 }
 0x366   : > { %1778 = vmatprep.subr.bf16.mxu0 %v2101_v4 }
 0x369   : > { %1780 = vmatpush3.bf16.msra.mxu0 %v2377_v31 }
 0x36a   : > { %1805 = vmatprep.subr.bf16.mxu0 %v2101_v4 }
 0x41f   : > { %v711_v3 = vpop.f32.mrb[4].mxu0 }
 0x420   : > { %v716_v6 = vrot.slane %v711_v3, 5  ;;  %v717_v9 = vrot.slane %v711_v3, 6  ;;  %v1492_v10 = vpop.f32.mrb[5].mxu0 }
 0x422   : > { %v720_v11 = vadd.f32 %v716_v6, %v2411_v36  ;;  %v721_v12 = vadd.f32 %v717_v9, %v2413_v37 }
 0x424   : > { %1917 = vtanh.f32 %v720_v11 }
 0x425   : > { %1919 = vtanh.f32 %v721_v12 }
 0x42e   : > { %v1918_v13 = vpop.eup %1917 }
 0x42f   : > { %v1920_v14 = vpop.eup %1919  ;;  %724 = vst [vmem:[%s2325_s7] sm:$0x8] %v1918_v13  ;;  %v728_v16 = vrot.slane %v1918_v13, 3 }
 0x430   : > { %725 = vst [vmem:[%s2325_s7 + $0x8] sm:$0x8] %v1920_v14  ;;  %v729_v17 = vrot.slane %v1920_v14, 2 }
 0x432   : > { %v730_v18 = vsel %vm470_vm2, %v729_v17, %v728_v16 }
 0x433   : > { %1526 = vmatmul.mubr.f32.vlgmr.msra.gmra.mrb[4].mxu1 %v730_v18 }
 0x434   : > { %1783 = vmatpush3.bf16.msra.mxu1 %v2333_v5  ;;  %1595 = vmatprep.mubr.msk.f32.mxu1 %vm2102_vm0, %v2103_v7 }
 0x435   : > { %1784 = vmatprep.subr.bf16.mxu1 %v2101_v4 }
 0x438   : > { %1786 = vmatpush3.bf16.msra.mxu1 %v2338_v8 }
 0x439   : > { %1787 = vmatprep.subr.bf16.mxu1 %v2101_v4 }
 0x43c   : > { %1789 = vmatpush3.bf16.msra.mxu1 %v2344_v15 }
 0x43d   : > { %1790 = vmatprep.subr.bf16.mxu1 %v2101_v4 }
 0x440   : > { %1792 = vmatpush3.bf16.msra.mxu1 %v2350_v19 }
 0x441   : > { %1793 = vmatprep.subr.bf16.mxu1 %v2101_v4 }
 0x444   : > { %1795 = vmatpush3.bf16.msra.mxu1 %v2359_v22 }
 0x445   : > { %1796 = vmatprep.subr.bf16.mxu1 %v2101_v4 }
 0x448   : > { %1798 = vmatpush3.bf16.msra.mxu1 %v2365_v25 }
 0x449   : > { %1799 = vmatprep.subr.bf16.mxu1 %v2101_v4 }
 0x44c   : > { %1801 = vmatpush3.bf16.msra.mxu1 %v2371_v28 }
 0x44d   : > { %1802 = vmatprep.subr.bf16.mxu1 %v2101_v4 }
 0x450   : > { %1804 = vmatpush3.bf16.msra.mxu1 %v2377_v31 }
 0x506   : > { %v798_v20 = vpop.f32.mrb[4].mxu1 }
 0x507   : > { %v803_v21 = vrot.slane %v798_v20, 4  ;;  %v804_v23 = vrot.slane %v798_v20, 5  ;;  %v1527_v24 = vpop.f32.mrb[5].mxu1 }
 0x509   : > { %v807_v26 = vadd.f32 %v803_v21, %v2411_v36  ;;  %v808_v27 = vadd.f32 %v804_v23, %v2413_v37 }
 0x50b   : > { %1921 = vtanh.f32 %v807_v26 }
 0x50c   : > { %1923 = vtanh.f32 %v808_v27 }
 0x515   : > { %v1922_v29 = vpop.eup %1921 }
 0x516   : > { %v1924_v30 = vpop.eup %1923  ;;  %811 = vst [vmem:[%s2325_s7] sm:$0x10] %v1922_v29  ;;  %v815_v32 = vrot.slane %v1922_v29, 4 }
 0x517   : > { %812 = vst [vmem:[%s2325_s7 + $0x8] sm:$0x10] %v1924_v30  ;;  %v816_v33 = vrot.slane %v1924_v30, 3 }
 0x519   : > { %v817_v34 = vsel %vm470_vm2, %v816_v33, %v815_v32 }
 0x51a   : > { %1561 = vmatmul.mubr.f32.vlgmr.msra.gmra.mrb[6].mxu0 %v817_v34 }
 0x51b   : > { %1807 = vmatpush3.bf16.msra.mxu0 %v2333_v5  ;;  %1630 = vmatprep.mubr.msk.f32.mxu0 %vm2102_vm0, %v2103_v7 }
 0x51c   : > { %1808 = vmatprep.subr.bf16.mxu0 %v2101_v4 }
 0x51f   : > { %1810 = vmatpush3.bf16.msra.mxu0 %v2338_v8 }
 0x520   : > { %1811 = vmatprep.subr.bf16.mxu0 %v2101_v4 }
 0x523   : > { %1813 = vmatpush3.bf16.msra.mxu0 %v2344_v15 }
 0x524   : > { %1814 = vmatprep.subr.bf16.mxu0 %v2101_v4 }
 0x527   : > { %1816 = vmatpush3.bf16.msra.mxu0 %v2350_v19 }
 0x528   : > { %1817 = vmatprep.subr.bf16.mxu0 %v2101_v4 }
 0x52b   : > { %1819 = vmatpush3.bf16.msra.mxu0 %v2359_v22 }
 0x52c   : > { %1820 = vmatprep.subr.bf16.mxu0 %v2101_v4 }
 0x52f   : > { %1822 = vmatpush3.bf16.msra.mxu0 %v2365_v25 }
 0x530   : > { %1823 = vmatprep.subr.bf16.mxu0 %v2101_v4 }
 0x533   : > { %1825 = vmatpush3.bf16.msra.mxu0 %v2371_v28 }
 0x534   : > { %1826 = vmatprep.subr.bf16.mxu0 %v2101_v4 }
 0x537   : > { %1828 = vmatpush3.bf16.msra.mxu0 %v2377_v31 }
 0x5ed   : > { %v885_v5 = vpop.f32.mrb[6].mxu0 }
 0x5ee   : > { %v890_v7 = vrot.slane %v885_v5, 3  ;;  %v891_v8 = vrot.slane %v885_v5, 4  ;;  %v1562_v15 = vpop.f32.mrb[7].mxu0 }
 0x5f0   : > { %v894_v19 = vadd.f32 %v890_v7, %v2411_v36  ;;  %v895_v22 = vadd.f32 %v891_v8, %v2413_v37 }
 0x5f2   : > { %1925 = vtanh.f32 %v894_v19 }
 0x5f3   : > { %1927 = vtanh.f32 %v895_v22 }
 0x5fc   : > { %v1926_v25 = vpop.eup %1925 }
 0x5fd   : > { %v1928_v35 = vpop.eup %1927  ;;  %898 = vst [vmem:[%s2325_s7] sm:$0x20] %v1926_v25  ;;  %v902_v38 = vrot.slane %v1926_v25, 5 }
 0x5fe   : > { %899 = vst [vmem:[%s2325_s7 + $0x8] sm:$0x20] %v1928_v35  ;;  %v903_v4 = vrot.slane %v1928_v35, 4 }
 0x600   : > { %v904_v28 = vsel %vm470_vm2, %v903_v4, %v902_v38 }
 0x601   : > { %1596 = vmatmul.mubr.f32.vlgmr.msra.gmra.mrb[6].mxu1 %v904_v28 }
 0x6d4   : > { %v972_v31 = vpop.f32.mrb[6].mxu1 }
 0x6d5   : > { %v977_v39 = vrot.slane %v972_v31, 2  ;;  %v978_v40 = vrot.slane %v972_v31, 3  ;;  %v1597_v41 = vpop.f32.mrb[7].mxu1 }
 0x6d7   : > { %v981_v42 = vadd.f32 %v977_v39, %v2411_v36  ;;  %v982_v43 = vadd.f32 %v978_v40, %v2413_v37 }
 0x6d9   : > { %1929 = vtanh.f32 %v981_v42 }
 0x6da   : > { %1931 = vtanh.f32 %v982_v43 }
 0x6e3   : > { %v1930_v44 = vpop.eup %1929 }
 0x6e4   : > { %v1932_v45 = vpop.eup %1931  ;;  %985 = vst [vmem:[%s2325_s7] sm:$0x40] %v1930_v44  ;;  %v989_v46 = vrot.slane %v1930_v44, 6 }
 0x6e5   : > { %986 = vst [vmem:[%s2325_s7 + $0x8] sm:$0x40] %v1932_v45  ;;  %v990_v47 = vrot.slane %v1932_v45, 5 }
 0x6e7   : > { %v991_v48 = vsel %vm470_vm2, %v990_v47, %v989_v46 }
 0x6e8   : > { %1631 = vmatmul.mubr.f32.vlgmr.msra.gmra.mrb[8].mxu0 %v991_v48 }
 0x7bb   : > { %v1059_v49 = vpop.f32.mrb[8].mxu0 }
 0x7bc   : > { %v1064_v50 = vrot.slane %v1059_v49, 1  ;;  %v1065_v51 = vrot.slane %v1059_v49, 2  ;;  %v1632_v52 = vpop.f32.mrb[9].mxu0 }
 0x7be   : > { %v1068_v53 = vadd.f32 %v1064_v50, %v2411_v36  ;;  %v1069_v54 = vadd.f32 %v1065_v51, %v2413_v37 }
 0x7c0   : > { %1933 = vtanh.f32 %v1068_v53 }
 0x7c1   : > { %1935 = vtanh.f32 %v1069_v54 }
 0x7ca   : > { %v1934_v55 = vpop.eup %1933 }
 0x7cb   : > { %v1936_v56 = vpop.eup %1935  ;;  %1072 = vst [vmem:[%s2325_s7] sm:$0x80] %v1934_v55  ;;  %1079 = vst [vmem:[#allocation2 - $0x7] sm:$0x80] %v1934_v55 }
 0x7cc   : > { %1073 = vst [vmem:[%s2325_s7 + $0x8] sm:$0x80] %v1936_v56  ;;  %v1076_v36 = vrot.slane %v1936_v56, 7 }
 0x7cd   : > { %2036 = shalt.err (!%p2033_p11)
}
 0x7ce   : > { %s2037_s17 = scalar_lea.hbm %s2545_s8, 256  ;;  %s2041_s15 = scalar_lea.hbm %s2598_s5, 512 }
 0x7cf   : > { %p2038_p12 = scmp.ne.s32.totalorder %s2545_s8, %s2037_s17  ;;  %p2042_p9 = scmp.lt.u32.totalorder %s2545_s8, %s2598_s5 }
 0x7d0   : > { %p2043_p13 = scmp.lt.u32.totalorder %s2041_s15, %s2037_s17  ;;  %p2045_p8 = scmp.lt.u32.totalorder %s2037_s17, %s2545_s8 }
 0x7d1   : > { %p2039_p3 = pnand %p2038_p12, %p2621_p10 }
 0x7d2   : > { %p2044_p7 = por %p2043_p13, %p2042_p9 }
 0x7d3   : > { %p2040_p6 = pneg %p2039_p3 }
 0x7d4   : > { %p2046_p2 = por %p2045_p8, %p2044_p7 }
 0x7d6   : > { %p2047_p4 = pnand %p2046_p2, %p2040_p6 }
 0x7d8   : > { %2050 = shalt.err (!%p2047_p4)
}
 0x7d9   : > { %s2105_s13 = smov 128   ;;  %s2106_s23 = smov 256   ;;  %1080 = vst [vmem:[#allocation2 + $0x1] sm:$0x1] %v1076_v36 }
 0x7da   : > { %s2107_s10 = smov 8  }
 0x7db   : > { %1839 = dma.vmem_to_hbm [thread:$0]  (%p2621_p10), %s2547_s14, 256, %s2545_s8, %s1082_s16, %s2105_s13, %s2106_s23, %s2107_s10  }
 0x7dc PF: > { %s1109_s12 = sand.u32 1, %s2081_s18   ;;  %p2622_p1 = scmp.ne.s32.totalorder %s2608_s6, 0 }
 0x7dd   : > { %p2623_p0 = scmp.ge.s32.totalorder %s2093_s21, 2  ;;  %s1110_s22 = scalar_lea.sflag [#allocation5], %s1109_s12 }
 0x7df   : > { %p1853_p5 = pnand %p2623_p0, %p2622_p1 }
 0x7e1   : > { %2076 = dma.done.wait (!%p1853_p5), %s1110_s22, 256  }
 0x7e2   : > { %2078 = vsyncadd (!%p1853_p5), %s1110_s22, 4294967040  ;;  %p19_p11 = scmp.ge.s32.totalorder %s2163_s24, 4   ;;  %s2624_s18 = smov %s2085_s19 }
 0x7e3   : > { %s2625_s19 = smov %s2089_s20  ;;  %s2626_s20 = smov %s2175_s27 }
 0x7e4   : > { %s2627_s21 = smov %s2163_s24  ;;  %21 = sbr.rel (!%p19_p11) target bundleno = 6 (0x6), region = 97 }
 0x7eb   :  { %1115 = vsyncpa [#allocation4], 1 }
 0x7ec   :  { %1117 = vsyncpa [#allocation4 + $0x1], 1 }
 0x7ed   :  { %1118 = vsyncpa [#allocation7], 1 }
 0x7ee   :  { %1119 = vsyncpa [#allocation5], 1 }
 0x7ef   :  { %1121 = vsyncpa [#allocation5 + $0x1], 1 }

</bundles_post_ra>
